<compile_context>
chip_gen: v6e
topology: v6e:2x2x1
jax: 0.10.0
libtpu: 0.0.40
codegen_flags: <defaults>
</compile_context>

<pallas_src>
import functools

import jax
import jax.numpy as jnp
from jax.experimental import pallas as pl
from jax.experimental.pallas import tpu as pltpu

LOG_STD_MIN = -20.0
LOG_STD_MAX = 2.0

H1 = 128          # linear1 output width
H2 = 64           # linear2 output width (padded to H2P inside the kernel path)
H2P = 128         # lane-dense padded hidden width


def _round_up(x, m):
    return ((x + m - 1) // m) * m


# --------------------------------------------------------------------------- #
# Kernel
# --------------------------------------------------------------------------- #
def policy_kernel(s_ref, w1_ref, b1_ref, w2_ref, b2_ref, wh_ref, bh_ref,
                  lo_ref, hi_ref, out_ref):
    # 3 matmuls (heads fused, H2 padded to 128) + relu + per-column clamp.
    x = s_ref[...].astype(w1_ref.dtype)
    h1 = jnp.dot(x, w1_ref[...], preferred_element_type=jnp.float32) + b1_ref[...]
    h1 = jnp.maximum(h1, 0.0)
    h2 = jnp.dot(h1.astype(w2_ref.dtype), w2_ref[...],
                 preferred_element_type=jnp.float32) + b2_ref[...]
    h2 = jnp.maximum(h2, 0.0)
    y = jnp.dot(h2.astype(wh_ref.dtype), wh_ref[...],
                preferred_element_type=jnp.float32) + bh_ref[...]
    # lo/hi are (-inf, +inf) on mean columns and (LOG_STD_MIN, LOG_STD_MAX) on
    # log_std columns, so a single min/max pair implements the selective clamp.
    out_ref[...] = jnp.minimum(jnp.maximum(y, lo_ref[...]),
                               hi_ref[...]).astype(out_ref.dtype)


# --------------------------------------------------------------------------- #
# One-time parameter preparation (hoisted out of the per-call hot path)
# --------------------------------------------------------------------------- #
def prepare_params(params, *, weight_dtype=jnp.float32):
    """Fuse / pad / cast the PolicyNet parameters once.

    Returns a pytree consumed by `policy_net_forward`:
      w1 [S,128], b1 [1,128], w2p [128,128], b2p [1,128],
      w_head [128, 2A], b_head [1, 2A], lo [1, 2A], hi [1, 2A]
    """
    w1, b1, w2, b2, wm, bm, ws, bs = params
    S = w1.shape[0]
    A = wm.shape[1]
    assert w1.shape == (S, H1) and w2.shape == (H1, H2)

    # Zero-pad the 128->64 layer to 128 output columns (lane-dense h2).
    w2p = jnp.zeros((H1, H2P), jnp.float32).at[:, :H2].set(w2)
    b2p = jnp.zeros((1, H2P), jnp.float32).at[:, :H2].set(b2)

    # Fuse the two heads into one [128, 2A] matmul (zero rows for the padded
    # part of h2 -> no contribution).
    outw = 2 * A
    w_head = (jnp.zeros((H2P, outw), jnp.float32)
              .at[:H2, :A].set(wm)
              .at[:H2, A:].set(ws))
    b_head = jnp.concatenate([bm, bs], axis=1)

    # Per-column clamp bounds: mean columns pass through, log_std columns clamp.
    lo = jnp.concatenate([jnp.full((1, A), -jnp.inf, jnp.float32),
                          jnp.full((1, A), LOG_STD_MIN, jnp.float32)], axis=1)
    hi = jnp.concatenate([jnp.full((1, A), jnp.inf, jnp.float32),
                          jnp.full((1, A), LOG_STD_MAX, jnp.float32)], axis=1)

    w1c = w1.astype(weight_dtype)
    w2c = w2p.astype(weight_dtype)
    whc = w_head.astype(weight_dtype)
    return (w1c, b1, w2c, b2p, whc, b_head, lo, hi)


# --------------------------------------------------------------------------- #
# Forward wrapper
# --------------------------------------------------------------------------- #
@functools.partial(jax.jit, static_argnames=("max_batch_tile", "min_grid_steps"))
def policy_net_forward(state, prepared, *, max_batch_tile=2048, min_grid_steps=2):
    """state: [B, state_dim] float32. Returns (mean, log_std), each [B, action_dim]."""
    B, S = state.shape
    w1, b1, w2, b2, wh, bh, lo, hi = prepared
    outw = wh.shape[1]
    A = outw // 2
    w_bytes = jnp.dtype(w1.dtype).itemsize

    # ---- Balanced batch tiling ----------------------------------------------
    # Big tiles amortize per-grid-step overhead; balanced sizing keeps padding
    # below one sublane group; >=2 parallel steps allow v7x 2-TC sharding.
    max_tile = max(8, _round_up(int(max_batch_tile), 8))
    n_steps = pl.cdiv(B, max_tile)
    if B >= 16:
        n_steps = max(n_steps, int(min_grid_steps))
    tile = _round_up(pl.cdiv(B, n_steps), 8)
    Bp = n_steps * tile
    if Bp != B:
        state_p = jnp.zeros((Bp, S), state.dtype).at[:B].set(state)
    else:
        state_p = state

    # Resident (constant index_map) weights/biases stay in VMEM across steps.
    def full(shape):
        return pl.BlockSpec(shape, lambda i: (0,) * len(shape))

    in_specs = [
        pl.BlockSpec((tile, S), lambda i: (i, 0)),   # state tile
        full((S, H1)), full((1, H1)),
        full((H1, H2P)), full((1, H2P)),
        full((H2P, outw)), full((1, outw)),
        full((1, outw)), full((1, outw)),
    ]
    out_specs = pl.BlockSpec((tile, outw), lambda i: (i, 0))

    flops = 2 * Bp * (S * H1 + H1 * H2P + H2P * outw)
    bytes_accessed = (4 * Bp * (S + outw)
                      + w_bytes * (S * H1 + H1 * H2P + H2P * outw)
                      + 4 * (H1 + H2P + 3 * outw))

    # VMEM footprint: double-buffered state + output tiles plus ~130 KB of
    # resident weights; at tile=2048 and small S/outw this is well under the
    # 16 MiB v5e scoped default (and the 32 MiB v6e/v7x defaults).
    out = pl.pallas_call(
        policy_kernel,
        out_shape=jax.ShapeDtypeStruct((Bp, outw), jnp.float32),
        grid_spec=pltpu.PrefetchScalarGridSpec(
            num_scalar_prefetch=0,
            grid=(n_steps,),
            in_specs=in_specs,
            out_specs=out_specs,
        ),
        compiler_params=pltpu.CompilerParams(
            dimension_semantics=("parallel",)),
        cost_estimate=pl.CostEstimate(
            flops=flops, transcendentals=0, bytes_accessed=bytes_accessed),
    )(state_p, w1, b1, w2, b2, wh, bh, lo, hi)

    mean = out[:B, :A]
    log_std = out[:B, A:]
    return mean, log_std


# --------------------------------------------------------------------------- #
# Reference + synthetic params
# --------------------------------------------------------------------------- #
def init_params(key, state_dim, action_dim):
    """Deterministic synthetic parameters (PyTorch Linear-style uniform fan-in init)."""
    ks = jax.random.split(key, 8)

    def linear(kw, kb, fan_in, fan_out):
        bound = 1.0 / jnp.sqrt(fan_in)
        w = jax.random.uniform(kw, (fan_in, fan_out), jnp.float32, -bound, bound)
        b = jax.random.uniform(kb, (1, fan_out), jnp.float32, -bound, bound)
        return w, b

    w1, b1 = linear(ks[0], ks[1], state_dim, H1)
    w2, b2 = linear(ks[2], ks[3], H1, H2)
    wm, bm = linear(ks[4], ks[5], H2, action_dim)
    ws, bs = linear(ks[6], ks[7], H2, action_dim)
    return (w1, b1, w2, b2, wm, bm, ws, bs)


def policy_net_ref(state, params):
    w1, b1, w2, b2, wm, bm, ws, bs = params
    h1 = jnp.maximum(state @ w1 + b1, 0.0)
    h2 = jnp.maximum(h1 @ w2 + b2, 0.0)
    mean = h2 @ wm + bm
    log_std = jnp.clip(h2 @ ws + bs, LOG_STD_MIN, LOG_STD_MAX)
    return mean, log_std


if __name__ == "__main__":
    state_dim = 16
    action_dim = 8

    key = jax.random.PRNGKey(0)
    k_params, k_s1, k_s2, k_s3 = jax.random.split(key, 4)
    params = init_params(k_params, state_dim, action_dim)
    prepared = prepare_params(params)           # one-time fuse/pad/cast

    # Case 1: small batch, 2 parallel grid steps of 8 rows each.
    batch = 16
    state = jax.random.normal(k_s1, (batch, state_dim), jnp.float32)
    mean, log_std = policy_net_forward(state, prepared)
    jax.block_until_ready((mean, log_std))
    ref_mean, ref_log_std = policy_net_ref(state, params)
    assert mean.shape == (batch, action_dim) and log_std.shape == (batch, action_dim)
    assert jnp.allclose(mean, ref_mean, atol=1e-5, rtol=1e-5)
    assert jnp.allclose(log_std, ref_log_std, atol=1e-5, rtol=1e-5)

    # Case 2: batch not a multiple of 8 — exercises the zero-pad / slice path.
    batch2 = 10
    state2 = jax.random.normal(k_s2, (batch2, state_dim), jnp.float32)
    mean2, log_std2 = policy_net_forward(state2, prepared)
    jax.block_until_ready((mean2, log_std2))
    ref_mean2, ref_log_std2 = policy_net_ref(state2, params)
    assert mean2.shape == (batch2, action_dim)
    assert jnp.allclose(mean2, ref_mean2, atol=1e-5, rtol=1e-5)
    assert jnp.allclose(log_std2, ref_log_std2, atol=1e-5, rtol=1e-5)

    # Case 3: multi-tile grid with balanced (non-power-of-2) tile size.
    batch3 = 300
    state3 = jax.random.normal(k_s3, (batch3, state_dim), jnp.float32)
    mean3, log_std3 = policy_net_forward(state3, prepared, max_batch_tile=128)
    jax.block_until_ready((mean3, log_std3))
    ref_mean3, ref_log_std3 = policy_net_ref(state3, params)
    assert mean3.shape == (batch3, action_dim)
    assert jnp.allclose(mean3, ref_mean3, atol=1e-5, rtol=1e-5)
    assert jnp.allclose(log_std3, ref_log_std3, atol=1e-5, rtol=1e-5)

    print("KERNEL_OK")
</pallas_src>

<mosaic_0001>
module attributes {stable_mosaic.version = 11 : i64} {
  func.func @policy_kernel(%arg0: i32, %arg1: memref<8x16xf32, #tpu.memory_space<vmem>>, %arg2: memref<16x128xf32, #tpu.memory_space<vmem>>, %arg3: memref<1x128xf32, #tpu.memory_space<vmem>>, %arg4: memref<128x128xf32, #tpu.memory_space<vmem>>, %arg5: memref<1x128xf32, #tpu.memory_space<vmem>>, %arg6: memref<128x16xf32, #tpu.memory_space<vmem>>, %arg7: memref<1x16xf32, #tpu.memory_space<vmem>>, %arg8: memref<1x16xf32, #tpu.memory_space<vmem>>, %arg9: memref<1x16xf32, #tpu.memory_space<vmem>>, %arg10: memref<8x16xf32, #tpu.memory_space<vmem>>) attributes {dimension_semantics = [#tpu.dimension_semantics<parallel>], iteration_bounds = array<i64: 2>, scalar_prefetch = 0 : i64, scratch_operands = 0 : i64, tpu.core_type = #tpu.core_type<tc>, window_params = [{transform_indices = @transform_0, window_bounds = array<i64: 8, 16>}, {pipeline_mode = #tpu.pipeline_mode<synchronous>, transform_indices = @transform_1, window_bounds = array<i64: 16, 128>}, {pipeline_mode = #tpu.pipeline_mode<synchronous>, transform_indices = @transform_2, window_bounds = array<i64: 1, 128>}, {pipeline_mode = #tpu.pipeline_mode<synchronous>, transform_indices = @transform_3, window_bounds = array<i64: 128, 128>}, {pipeline_mode = #tpu.pipeline_mode<synchronous>, transform_indices = @transform_4, window_bounds = array<i64: 1, 128>}, {pipeline_mode = #tpu.pipeline_mode<synchronous>, transform_indices = @transform_5, window_bounds = array<i64: 128, 16>}, {pipeline_mode = #tpu.pipeline_mode<synchronous>, transform_indices = @transform_6, window_bounds = array<i64: 1, 16>}, {pipeline_mode = #tpu.pipeline_mode<synchronous>, transform_indices = @transform_7, window_bounds = array<i64: 1, 16>}, {pipeline_mode = #tpu.pipeline_mode<synchronous>, transform_indices = @transform_8, window_bounds = array<i64: 1, 16>}, {transform_indices = @transform_9, window_bounds = array<i64: 8, 16>}]} {
    %c0 = arith.constant 0 : index
    %c0_0 = arith.constant 0 : index
    %0 = vector.load %arg1[%c0, %c0_0] : memref<8x16xf32, #tpu.memory_space<vmem>>, vector<8x16xf32>
    %c0_1 = arith.constant 0 : index
    %c0_2 = arith.constant 0 : index
    %1 = vector.load %arg2[%c0_1, %c0_2] : memref<16x128xf32, #tpu.memory_space<vmem>>, vector<16x128xf32>
    %cst = arith.constant dense<0.000000e+00> : vector<8x128xf32>
    %2 = tpu.matmul %0, %1, %cst {dimension_numbers = #tpu.dot_dimension_numbers<[1], [0], [0], [1], [0, 0, 1, 1], [], []>} : vector<8x16xf32>, vector<16x128xf32>, vector<8x128xf32> -> vector<8x128xf32>
    %c0_3 = arith.constant 0 : index
    %c0_4 = arith.constant 0 : index
    %3 = vector.load %arg3[%c0_3, %c0_4] : memref<1x128xf32, #tpu.memory_space<vmem>>, vector<1x128xf32>
    %4 = vector.broadcast %3 : vector<1x128xf32> to vector<8x128xf32>
    %5 = arith.addf %2, %4 : vector<8x128xf32>
    %cst_5 = arith.constant 0.000000e+00 : f32
    %6 = vector.broadcast %cst_5 : f32 to vector<8x128xf32>
    %7 = arith.maximumf %5, %6 : vector<8x128xf32>
    %c0_6 = arith.constant 0 : index
    %c0_7 = arith.constant 0 : index
    %8 = vector.load %arg4[%c0_6, %c0_7] : memref<128x128xf32, #tpu.memory_space<vmem>>, vector<128x128xf32>
    %cst_8 = arith.constant dense<0.000000e+00> : vector<8x128xf32>
    %9 = tpu.matmul %7, %8, %cst_8 {dimension_numbers = #tpu.dot_dimension_numbers<[1], [0], [0], [1], [0, 0, 1, 1], [], []>} : vector<8x128xf32>, vector<128x128xf32>, vector<8x128xf32> -> vector<8x128xf32>
    %c0_9 = arith.constant 0 : index
    %c0_10 = arith.constant 0 : index
    %10 = vector.load %arg5[%c0_9, %c0_10] : memref<1x128xf32, #tpu.memory_space<vmem>>, vector<1x128xf32>
    %11 = vector.broadcast %10 : vector<1x128xf32> to vector<8x128xf32>
    %12 = arith.addf %9, %11 : vector<8x128xf32>
    %cst_11 = arith.constant 0.000000e+00 : f32
    %13 = vector.broadcast %cst_11 : f32 to vector<8x128xf32>
    %14 = arith.maximumf %12, %13 : vector<8x128xf32>
    %c0_12 = arith.constant 0 : index
    %c0_13 = arith.constant 0 : index
    %15 = vector.load %arg6[%c0_12, %c0_13] : memref<128x16xf32, #tpu.memory_space<vmem>>, vector<128x16xf32>
    %cst_14 = arith.constant dense<0.000000e+00> : vector<8x16xf32>
    %16 = tpu.matmul %14, %15, %cst_14 {dimension_numbers = #tpu.dot_dimension_numbers<[1], [0], [0], [1], [0, 0, 1, 1], [], []>} : vector<8x128xf32>, vector<128x16xf32>, vector<8x16xf32> -> vector<8x16xf32>
    %c0_15 = arith.constant 0 : index
    %c0_16 = arith.constant 0 : index
    %17 = vector.load %arg7[%c0_15, %c0_16] : memref<1x16xf32, #tpu.memory_space<vmem>>, vector<1x16xf32>
    %18 = vector.broadcast %17 : vector<1x16xf32> to vector<8x16xf32>
    %19 = arith.addf %16, %18 : vector<8x16xf32>
    %c0_17 = arith.constant 0 : index
    %c0_18 = arith.constant 0 : index
    %20 = vector.load %arg8[%c0_17, %c0_18] : memref<1x16xf32, #tpu.memory_space<vmem>>, vector<1x16xf32>
    %21 = vector.broadcast %20 : vector<1x16xf32> to vector<8x16xf32>
    %22 = arith.maximumf %19, %21 : vector<8x16xf32>
    %c0_19 = arith.constant 0 : index
    %c0_20 = arith.constant 0 : index
    %23 = vector.load %arg9[%c0_19, %c0_20] : memref<1x16xf32, #tpu.memory_space<vmem>>, vector<1x16xf32>
    %24 = vector.broadcast %23 : vector<1x16xf32> to vector<8x16xf32>
    %25 = arith.minimumf %22, %24 : vector<8x16xf32>
    %c0_21 = arith.constant 0 : index
    %c0_22 = arith.constant 0 : index
    %26 = vector.load %arg10[%c0_21, %c0_22] : memref<8x16xf32, #tpu.memory_space<vmem>>, vector<8x16xf32>
    tpu.vector_store %arg10[%c0_21, %c0_22], %25 {strides = array<i32>} : memref<8x16xf32, #tpu.memory_space<vmem>>, vector<8x16xf32>,
    return
  }
  func.func @transform_0(%arg0: i32) -> (i32, i32) {
    %c0_i32 = arith.constant 0 : i32
    %c0_i32_0 = arith.constant 0 : i32
    return %arg0, %c0_i32 : i32, i32
  }
  func.func @transform_1(%arg0: i32) -> (i32, i32) {
    %c0_i32 = arith.constant 0 : i32
    %c0_i32_0 = arith.constant 0 : i32
    %c0_i32_1 = arith.constant 0 : i32
    return %c0_i32, %c0_i32_0 : i32, i32
  }
  func.func @transform_2(%arg0: i32) -> (i32, i32) {
    %c0_i32 = arith.constant 0 : i32
    %c0_i32_0 = arith.constant 0 : i32
    %c0_i32_1 = arith.constant 0 : i32
    return %c0_i32, %c0_i32_0 : i32, i32
  }
  func.func @transform_3(%arg0: i32) -> (i32, i32) {
    %c0_i32 = arith.constant 0 : i32
    %c0_i32_0 = arith.constant 0 : i32
    %c0_i32_1 = arith.constant 0 : i32
    return %c0_i32, %c0_i32_0 : i32, i32
  }
  func.func @transform_4(%arg0: i32) -> (i32, i32) {
    %c0_i32 = arith.constant 0 : i32
    %c0_i32_0 = arith.constant 0 : i32
    %c0_i32_1 = arith.constant 0 : i32
    return %c0_i32, %c0_i32_0 : i32, i32
  }
  func.func @transform_5(%arg0: i32) -> (i32, i32) {
    %c0_i32 = arith.constant 0 : i32
    %c0_i32_0 = arith.constant 0 : i32
    %c0_i32_1 = arith.constant 0 : i32
    return %c0_i32, %c0_i32_0 : i32, i32
  }
  func.func @transform_6(%arg0: i32) -> (i32, i32) {
    %c0_i32 = arith.constant 0 : i32
    %c0_i32_0 = arith.constant 0 : i32
    %c0_i32_1 = arith.constant 0 : i32
    return %c0_i32, %c0_i32_0 : i32, i32
  }
  func.func @transform_7(%arg0: i32) -> (i32, i32) {
    %c0_i32 = arith.constant 0 : i32
    %c0_i32_0 = arith.constant 0 : i32
    %c0_i32_1 = arith.constant 0 : i32
    return %c0_i32, %c0_i32_0 : i32, i32
  }
  func.func @transform_8(%arg0: i32) -> (i32, i32) {
    %c0_i32 = arith.constant 0 : i32
    %c0_i32_0 = arith.constant 0 : i32
    %c0_i32_1 = arith.constant 0 : i32
    return %c0_i32, %c0_i32_0 : i32, i32
  }
  func.func @transform_9(%arg0: i32) -> (i32, i32) {
    %c0_i32 = arith.constant 0 : i32
    %c0_i32_0 = arith.constant 0 : i32
    return %arg0, %c0_i32 : i32, i32
  }
}

</mosaic_0001>

<bundles_post_ra>
// kernel: policy_net_forward.1
= control target key start
LH: loop header
LB: loop body
LE: loop exit
PB: predicated region body
PF: predicated region fallthrough
CT: control target
= control target key end

     0   :  { %14 = vsyncpa [#allocation3], 0  ;;  %s944_s30 = smov 0   ;;  %s1143_s0 = inlined_call_operand.vmem [shape: f32[16,16], index: 0, kind: input, shape index: {}]   ;;  %s1144_s1 = inlined_call_operand.hbm [shape: f32[16,128], index: 1, kind: input, shape index: {}]   ;;  %s1145_s2 = inlined_call_operand.vmem [shape: f32[1,128], index: 2, kind: input, shape index: {}]   ;;  %s1146_s3 = inlined_call_operand.vmem [shape: f32[128,128], index: 3, kind: input, shape index: {}]   ;;  %s1147_s4 = inlined_call_operand.vmem [shape: f32[1,128], index: 4, kind: input, shape index: {}]   ;;  %s1148_s5 = inlined_call_operand.vmem [shape: f32[128,16], index: 5, kind: input, shape index: {}]   ;;  %s1149_s6 = inlined_call_operand.vmem [shape: f32[1,16], index: 6, kind: input, shape index: {}]   ;;  %s1150_s7 = inlined_call_operand.vmem [shape: f32[1,16], index: 7, kind: input, shape index: {}]   ;;  %s1151_s8 = inlined_call_operand.vmem [shape: f32[1,16], index: 8, kind: input, shape index: {}]   ;;  %s1152_s9 = inlined_call_operand.vmem [shape: f32[16,16], index: 9, kind: output, shape index: {}]  }
   0x1 LB: > { %s950_s10 = sadd.s32 4294967295, %s887_s30   ;;  %p699_p0 = scmp.ge.s32.totalorder %s887_s30, 1  ;;  %s887_s30 = sphi %s944_s30, %s20_s30  }
   0x2   : > { %p245_p1 = scmp.lt.s32.totalorder %s887_s30, 3  ;;  %s889_s11 = smov [#allocation2]  }
   0x3   : > { %s257_s12 = sshll.u32 %s889_s11, 4  ;;  %p836_p3 = scmp.eq.s32.totalorder %s950_s10, 0  ;;  %s258_s12 = int_to_ptr.vmem [resolvable:$true] %s257_s12 }
   0x4   : > { %p954_p2 = pnand %p699_p0, %p245_p1  ;;  %s862_s14 = scalar_lea.vmem %s258_s12, 256 }
   0x5   : > { %p863_p7 = scmp.ne.s32.totalorder %s258_s12, %s862_s14  ;;  %p870_p10 = scmp.lt.s32.totalorder %s258_s12, %s258_s12 }
   0x6   : > { %p832_p4 = pneg %p954_p2  ;;  %p871_p11 = scmp.lt.s32.totalorder %s862_s14, %s862_s14 }
   0x8   : > { %p833_p5 = pnand %p836_p3, %p832_p4  ;;  %p872_p12 = por %p871_p11, %p870_p10 }
   0xa   : > { %p853_p6 = pneg %p833_p5 }
   0xc   : > { %p865_p8 = pnand %p863_p7, %p853_p6 }
   0xe   : > { %p866_p9 = pneg %p865_p8 }
  0x10   : > { %p873_p13 = pnand %p872_p12, %p866_p9 }
  0x12   : > { %876 = shalt.err (!%p873_p13)
}
  0x13   : > { %s890_s15 = smov 128   ;;  %s891_s16 = smov 8  }
  0x14   : > { %835 = dma.hbm_to_vmem [thread:$0]  (!%p833_p5), %s1144_s1, 256, %s258_s12, [#allocation3], %s890_s15, %s890_s15, %s891_s16  }
  0x15   : > { %301 = sbr.rel (%p954_p2) target bundleno = 627 (0x273), region = 56 }
  0x1a   : > { %882 = dma.done.wait (%p836_p3), [#allocation3], 256  }
  0x1b   : > { %884 = vsyncadd (%p836_p3), [#allocation3], 4294967040  ;;  %p335_p0 = scmp.lt.s32.totalorder %s950_s10, 1  ;;  %v892_v0 = vmov 0.0   ;;  %vm893_vm0 = vmmov 0   ;;  %v345_v1 = vld [vmem:[#allocation2 + $0x8] sm:$0xff] }
  0x1c   : > { %751 = vmatprep.subr.mxu0 %v892_v0  ;;  %755 = vmatprep.mubr.msk.f32.mxu0 %vm893_vm0, %v892_v0  ;;  %v344_v2 = vld [vmem:[#allocation2] sm:$0xff]  ;;  %vm353_vm1 = vcmask 130048   ;;  %v443_v4 = vld [vmem:[%s1146_s3 + $0x78] sm:$0xff]  ;;  %v442_v5 = vld [vmem:[%s1146_s3 + $0x70] sm:$0xff] }
  0x1d   : > { %s1155_s10 = smov (!%p335_p0, %s950_s10), 1  ;;  %758 = vmatprep.subr.mxu1 %v892_v0  ;;  %790 = vmatprep.mubr.msk.f32.mxu1 %vm893_vm0, %v892_v0  ;;  %v441_v6 = vld [vmem:[%s1146_s3 + $0x68] sm:$0xff]  ;;  %v440_v7 = vld [vmem:[%s1146_s3 + $0x60] sm:$0xff]  ;;  %v439_v8 = vld [vmem:[%s1146_s3 + $0x58] sm:$0xff] }
  0x1e   : > { %s704_s19 = sshll.u32 %s1155_s10, 3  ;;  %752 = vmatpush3.msra.mxu0 %v345_v1  ;;  %759 = vmatpush3.msra.mxu1 %v443_v4  ;;  %v438_v9 = vld [vmem:[%s1146_s3 + $0x50] sm:$0xff]  ;;  %v437_v10 = vld [vmem:[%s1146_s3 + $0x48] sm:$0xff]  ;;  %v436_v11 = vld [vmem:[%s1146_s3 + $0x40] sm:$0xff] }
  0x1f   : > { %s338_s22 = scalar_lea.vmem %s1143_s0, %s704_s19  ;;  %753 = vmatprep.subr.mxu0 %v892_v0  ;;  %760 = vmatprep.subr.mxu1 %v892_v0  ;;  %v435_v12 = vld [vmem:[%s1146_s3 + $0x38] sm:$0xff]  ;;  %v434_v13 = vld [vmem:[%s1146_s3 + $0x30] sm:$0xff]  ;;  %v433_v14 = vld [vmem:[%s1146_s3 + $0x28] sm:$0xff]  ;;  %s342_s27 = scalar_lea.vmem %s1152_s9, %s704_s19 }
  0x20   : > { %v343_v3 = vld [vmem:[%s338_s22] sm:$0xff]  ;;  %754 = vmatpush3.msra.mxu0 %v344_v2  ;;  %761 = vmatpush3.msra.mxu1 %v442_v5  ;;  %v431_v16 = vld [vmem:[%s1146_s3 + $0x18] sm:$0xff]  ;;  %v430_v17 = vld [vmem:[%s1146_s3 + $0x10] sm:$0xff] }
  0x21   : > { %756 = vmatmul.mubr.msk.f32.vlgmr.msra.gmra.mxu0 %vm353_vm1, %v343_v3  ;;  %762 = vmatprep.subr.mxu1 %v892_v0  ;;  %v432_v15 = vld [vmem:[%s1146_s3 + $0x20] sm:$0xff]  ;;  %v429_v18 = vld [vmem:[%s1146_s3 + $0x8] sm:$0xff]  ;;  %v537_v20 = vld [vmem:[%s1148_s5 + $0x78] sm:$0xff] }
  0x22   : > { %793 = vmatprep.subr.mxu0 %v892_v0  ;;  %763 = vmatpush3.msra.mxu1 %v441_v6  ;;  %v428_v19 = vld [vmem:[%s1146_s3] sm:$0xff]  ;;  %v536_v21 = vld [vmem:[%s1148_s5 + $0x70] sm:$0xff]  ;;  %v535_v22 = vld [vmem:[%s1148_s5 + $0x68] sm:$0xff] }
  0x23   : > { %825 = vmatprep.mubr.msk.f32.mxu0 %vm893_vm0, %v892_v0  ;;  %764 = vmatprep.subr.mxu1 %v892_v0  ;;  %v534_v23 = vld [vmem:[%s1148_s5 + $0x60] sm:$0xff]  ;;  %v533_v24 = vld [vmem:[%s1148_s5 + $0x58] sm:$0xff]  ;;  %v532_v25 = vld [vmem:[%s1148_s5 + $0x50] sm:$0xff] }
  0x24   : > { %765 = vmatpush3.msra.mxu1 %v440_v7  ;;  %794 = vmatpush3.msra.mxu0 %v537_v20  ;;  %v531_v26 = vld [vmem:[%s1148_s5 + $0x48] sm:$0xff]  ;;  %v530_v27 = vld [vmem:[%s1148_s5 + $0x40] sm:$0xff]  ;;  %v529_v28 = vld [vmem:[%s1148_s5 + $0x38] sm:$0xff] }
  0x25   : > { %766 = vmatprep.subr.mxu1 %v892_v0  ;;  %795 = vmatprep.subr.mxu0 %v892_v0  ;;  %v528_v29 = vld [vmem:[%s1148_s5 + $0x30] sm:$0xff]  ;;  %v527_v30 = vld [vmem:[%s1148_s5 + $0x28] sm:$0xff]  ;;  %v526_v31 = vld [vmem:[%s1148_s5 + $0x20] sm:$0xff] }
  0x26   : > { %767 = vmatpush3.msra.mxu1 %v439_v8  ;;  %796 = vmatpush3.msra.mxu0 %v536_v21  ;;  %v525_v32 = vld [vmem:[%s1148_s5 + $0x18] sm:$0xff]  ;;  %v706_v33 = vld [vmem:[%s1145_s2] ss:$0 sm:$0xff]  ;;  %v524_v38 = vld [vmem:[%s1148_s5 + $0x10] sm:$0xff] }
  0x27   : > { %768 = vmatprep.subr.mxu1 %v892_v0  ;;  %797 = vmatprep.subr.mxu0 %v892_v0  ;;  %v523_v39 = vld [vmem:[%s1148_s5 + $0x8] sm:$0xff]  ;;  %v522_v40 = vld [vmem:[%s1148_s5] sm:$0xff] }
  0x28   : > { %769 = vmatpush3.msra.mxu1 %v438_v9  ;;  %798 = vmatpush3.msra.mxu0 %v535_v22  ;;  %v708_v41 = vld [vmem:[%s1147_s4] ss:$0 sm:$0xff] }
  0x29   : > { %770 = vmatprep.subr.mxu1 %v892_v0  ;;  %799 = vmatprep.subr.mxu0 %v892_v0  ;;  %v709_v46 = vld [vmem:[%s1149_s6] ss:$0 sm:$0xff] }
  0x2a   : > { %771 = vmatpush3.msra.mxu1 %v437_v10  ;;  %800 = vmatpush3.msra.mxu0 %v534_v23  ;;  %v710_v48 = vld [vmem:[%s1150_s7] ss:$0 sm:$0xff] }
  0x2b   : > { %772 = vmatprep.subr.mxu1 %v892_v0  ;;  %801 = vmatprep.subr.mxu0 %v892_v0  ;;  %v711_v50 = vld [vmem:[%s1151_s8] ss:$0 sm:$0xff] }
  0x2c   : > { %773 = vmatpush3.msra.mxu1 %v436_v11  ;;  %802 = vmatpush3.msra.mxu0 %v533_v24 }
  0x2d   : > { %774 = vmatprep.subr.mxu1 %v892_v0  ;;  %803 = vmatprep.subr.mxu0 %v892_v0 }
  0x2e   : > { %775 = vmatpush3.msra.mxu1 %v435_v12  ;;  %804 = vmatpush3.msra.mxu0 %v532_v25 }
  0x2f   : > { %776 = vmatprep.subr.mxu1 %v892_v0  ;;  %805 = vmatprep.subr.mxu0 %v892_v0 }
  0x30   : > { %777 = vmatpush3.msra.mxu1 %v434_v13  ;;  %806 = vmatpush3.msra.mxu0 %v531_v26 }
  0x31   : > { %778 = vmatprep.subr.mxu1 %v892_v0  ;;  %807 = vmatprep.subr.mxu0 %v892_v0 }
  0x32   : > { %779 = vmatpush3.msra.mxu1 %v433_v14  ;;  %808 = vmatpush3.msra.mxu0 %v530_v27 }
  0x33   : > { %780 = vmatprep.subr.mxu1 %v892_v0  ;;  %809 = vmatprep.subr.mxu0 %v892_v0 }
  0x34   : > { %781 = vmatpush3.msra.mxu1 %v432_v15  ;;  %810 = vmatpush3.msra.mxu0 %v529_v28 }
  0x35   : > { %782 = vmatprep.subr.mxu1 %v892_v0  ;;  %811 = vmatprep.subr.mxu0 %v892_v0 }
  0x36   : > { %783 = vmatpush3.msra.mxu1 %v431_v16  ;;  %812 = vmatpush3.msra.mxu0 %v528_v29 }
  0x37   : > { %784 = vmatprep.subr.mxu1 %v892_v0  ;;  %813 = vmatprep.subr.mxu0 %v892_v0 }
  0x38   : > { %785 = vmatpush3.msra.mxu1 %v430_v17  ;;  %814 = vmatpush3.msra.mxu0 %v527_v30 }
  0x39   : > { %786 = vmatprep.subr.mxu1 %v892_v0  ;;  %815 = vmatprep.subr.mxu0 %v892_v0 }
  0x3a   : > { %787 = vmatpush3.msra.mxu1 %v429_v18  ;;  %816 = vmatpush3.msra.mxu0 %v526_v31 }
  0x3b   : > { %788 = vmatprep.subr.mxu1 %v892_v0  ;;  %817 = vmatprep.subr.mxu0 %v892_v0 }
  0x3c   : > { %789 = vmatpush3.msra.mxu1 %v428_v19  ;;  %818 = vmatpush3.msra.mxu0 %v525_v32 }
  0x3d   : > { %819 = vmatprep.subr.mxu0 %v892_v0 }
  0x3e   : > { %820 = vmatpush3.msra.mxu0 %v524_v38 }
  0x3f   : > { %821 = vmatprep.subr.mxu0 %v892_v0 }
  0x40   : > { %822 = vmatpush3.msra.mxu0 %v523_v39 }
  0x41   : > { %823 = vmatprep.subr.mxu0 %v892_v0 }
  0x42   : > { %824 = vmatpush3.msra.mxu0 %v522_v40 }
  0xe1   : > { %v423_v34 = vpop.f32.mrf.mxu0 }
  0xe2   : > { %v424_v35 = vadd.f32 %v706_v33, %v423_v34 }
  0xe3   : > { %v757_v36 = vpop.f32.mrf.mxu0 }
  0xe4   : > { %v427_v37 = vmax.f32 %v424_v35, 0.0 }
  0xe6   : > { %791 = vmatmul.mubr.f32.vlgmr.msra.gmra.mxu1 %v427_v37 }
 0x1a6   : > { %v517_v42 = vpop.f32.mrf.mxu1 }
 0x1a7   : > { %v518_v43 = vadd.f32 %v708_v41, %v517_v42 }
 0x1a8   : > { %v792_v44 = vpop.f32.mrf.mxu1 }
 0x1a9   : > { %v521_v45 = vmax.f32 %v518_v43, 0.0 }
 0x1ab   : > { %826 = vmatmul.mubr.f32.vlgmr.msra.gmra.mxu0 %v521_v45 }
 0x26b   : > { %v611_v47 = vpop.f32.mrf.mxu0 }
 0x26c   : > { %v612_v49 = vadd.f32 %v709_v46, %v611_v47 }
 0x26d   : > { %v827_v51 = vpop.f32.mrf.mxu0 }
 0x26e   : > { %v622_v52 = vmax.f32 %v612_v49, %v710_v48 }
 0x270   : > { %v630_v53 = vmin.f32 %v622_v52, %v711_v50 }
 0x272   : > { %631 = vst.msk [vmem:[%s342_s27] sm:$0xff] %vm353_vm1, %v630_v53 }
 0x273 PF: > { %s20_s30 = sadd.s32 1, %s887_s30  }
 0x274   : > { %p17_p1 = scmp.ge.s32.totalorder %s20_s30, 4  }
 0x276   :  { %19 = sbr.rel (!%p17_p1) target bundleno = 1 (0x1), region = 91 }
 0x27b   :  { %651 = vsyncpa [#allocation3], 1 }
 0x27c   :  { %653 = vsyncpa [#allocation3 + $0x1], 1 }

</bundles_post_ra>
